<compile_context>
chip_gen: v7x
topology: tpu7x:2x2x1
jax: 0.10.0
libtpu: 0.0.40
codegen_flags: <defaults>
</compile_context>

<pallas_src>
import functools

import jax
import jax.numpy as jnp
from jax.experimental import pallas as pl
from jax.experimental.pallas import tpu as pltpu


def _rsoftmax_kernel(x_ref, o_ref, *, radix, cardinality, f, fold):
    """Per-row split-attention softmax.

    x_ref / o_ref: (TB, fold * cardinality * radix * f).
    Input channel layout  (per fold j): (cardinality, radix, f)
    Output channel layout (per fold j): (radix, cardinality, f)
      out[:, j*cw + r*card*f + c*f + i] = softmax_r(in[:, j*cw + c*radix*f + r*f + i])
    """
    cw = cardinality * radix * f          # per-fold channel width
    cf = cardinality * f                  # per-(fold, radix) output chunk width
    aligned = (cf % 128 == 0)             # unmasked per-chunk stores possible

    out_parts = []                        # used only when not `aligned`
    for j in range(fold):
        # scaled[r][c]: the (TB, f) output piece for this fold.
        scaled = [[None] * cardinality for _ in range(radix)]
        for c in range(cardinality):
            base = j * cw + c * radix * f
            # Slice the ref directly: no full-tile f32 copy, per-chunk loads
            # keep the vreg/VMEM working set tiny even for large blocks.
            xs = [x_ref[:, base + r * f: base + (r + 1) * f] for r in range(radix)]
            m = xs[0]
            for r in range(1, radix):
                m = jnp.maximum(m, xs[r])                    # VPU, input dtype
            m32 = m.astype(jnp.float32)
            es = [jnp.exp(x.astype(jnp.float32) - m32) for x in xs]   # EUP
            s = es[0]
            for r in range(1, radix):
                s = s + es[r]
            inv = pl.reciprocal(s, approx=True)              # EUP slot
            for r in range(radix):
                scaled[r][c] = (es[r] * inv).astype(o_ref.dtype)
        for r in range(radix):
            chunk = (scaled[r][0] if cardinality == 1
                     else jnp.concatenate(scaled[r], axis=-1))
            if aligned:
                start = j * cw + r * cf
                o_ref[:, start:start + cf] = chunk           # unmasked lane-aligned store
            else:
                out_parts.append(chunk)
    if not aligned:
        out = (out_parts[0] if len(out_parts) == 1
               else jnp.concatenate(out_parts, axis=-1))
        o_ref[...] = out                                     # single lane-dense store


def _sigmoid_kernel(x_ref, o_ref):
    x = x_ref[...].astype(jnp.float32)
    # Exact: sigmoid(x) = 0.5 * tanh(0.5*x) + 0.5  (single EUP transcendental).
    o_ref[...] = (0.5 * jnp.tanh(0.5 * x) + 0.5).astype(o_ref.dtype)


def _pick_fold(batch, width):
    """Fold k batch rows into lanes so the tile lane width reaches >= 128."""
    if width >= 128 or batch <= 1:
        return 1
    k = min(batch, -(-128 // width))      # ceil(128 / width)
    while k > 1 and batch % k:
        k -= 1
    return k


def _pick_block_rows(batch, width, itemsize, sub):
    """Rows per block: ~2 MiB per buffer, multiple of the sublane packing."""
    target_bytes = 2 << 20
    rows = max(1, target_bytes // max(1, width * itemsize))
    if rows >= batch:
        # Whole array fits one block; still split into >=2 grid steps when
        # there is enough work so v7x can shard the batch axis over its 2 TCs.
        if batch >= 2 * sub:
            half = (batch + 1) // 2
            rows = ((half + sub - 1) // sub) * sub
        else:
            return batch
    rows = max(sub, (rows // sub) * sub)
    return min(rows, batch)


def _tiled_call(kernel, x2d, block_rows=None, flops_per_elem=4, trans_per_elem=1):
    rows, width = x2d.shape
    itemsize = x2d.dtype.itemsize
    sub = max(8, 32 // max(1, itemsize))   # 8 for f32, 16 for bf16, 32 for int8
    tb = block_rows if block_rows is not None else _pick_block_rows(
        rows, width, itemsize, sub)
    tb = max(1, min(tb, rows))
    grid = (pl.cdiv(rows, tb),)

    n = rows * width
    block_bytes = tb * width * itemsize
    # 2 arrays x 2 pipeline buffers + generous headroom for in-kernel f32 temps;
    # stays well below v7x's 64 MiB physical VMEM.
    vmem_limit = int(min(max(4 * block_bytes + 4 * tb * width * 4 + (4 << 20),
                             32 << 20), 56 << 20))

    return pl.pallas_call(
        kernel,
        out_shape=jax.ShapeDtypeStruct((rows, width), x2d.dtype),
        grid=grid,
        in_specs=[pl.BlockSpec((tb, width), lambda i: (i, 0))],
        out_specs=pl.BlockSpec((tb, width), lambda i: (i, 0)),
        compiler_params=pltpu.CompilerParams(
            dimension_semantics=("parallel",),   # v7x: shard batch over both TCs
            vmem_limit_bytes=vmem_limit),
        cost_estimate=pl.CostEstimate(
            flops=flops_per_elem * n,
            transcendentals=trans_per_elem * n,
            bytes_accessed=2 * n * itemsize),
    )(x2d)


class RSoftMax:
    """JAX/Pallas equivalent of the PyTorch rSoftMax module."""

    def __init__(self, radix, cardinality, block_rows=None):
        self.radix = radix
        self.cardinality = cardinality
        self.block_rows = block_rows   # optional override of the batch tile

    def __call__(self, x):
        batch = x.shape[0]
        c_total = 1
        for d in x.shape[1:]:
            c_total *= d

        if self.radix > 1:
            group = self.cardinality * self.radix
            assert c_total % group == 0, (
                f"channels {c_total} not divisible by cardinality*radix={group}")
            f = c_total // group
            fold = _pick_fold(batch, c_total)
            x2d = x.reshape(batch // fold, fold * c_total)   # free: contiguous reshape
            kern = functools.partial(_rsoftmax_kernel, radix=self.radix,
                                     cardinality=self.cardinality, f=f, fold=fold)
            out = _tiled_call(kern, x2d, self.block_rows,
                              flops_per_elem=4, trans_per_elem=1)
            return out.reshape(batch, c_total)               # torch: reshape(batch, -1)
        else:
            fold = _pick_fold(batch, c_total)
            x2d = x.reshape(batch // fold, fold * c_total)
            out = _tiled_call(_sigmoid_kernel, x2d, self.block_rows,
                              flops_per_elem=2, trans_per_elem=1)
            return out.reshape(x.shape)                      # sigmoid keeps shape


def _reference(x, radix, cardinality):
    batch = x.shape[0]
    if radix > 1:
        c_total = 1
        for d in x.shape[1:]:
            c_total *= d
        f = c_total // (cardinality * radix)
        x_r = x.reshape(batch, cardinality, radix, f)
        x_t = jnp.transpose(x_r, (0, 2, 1, 3))
        return jax.nn.softmax(x_t, axis=1).reshape(batch, -1)
    return jax.nn.sigmoid(x)


if __name__ == "__main__":
    key = jax.random.PRNGKey(0)
    k1, k2, k3, k4 = jax.random.split(key, 4)

    # 1) radix>1, cardinality>1, tiny channels -> lane folding kicks in.
    #    x mimics fc2 output (B, card*radix*f, 1, 1): card=2, radix=2, f=4.
    x1 = jax.random.normal(k1, (2, 16, 1, 1), dtype=jnp.float32)
    y1 = jax.block_until_ready(RSoftMax(2, 2)(x1))
    assert y1.shape == (2, 16), y1.shape
    assert jnp.allclose(y1, _reference(x1, 2, 2), atol=2e-3, rtol=2e-3)

    # 2) radix>1, cardinality==1, larger batch -> folding + multi-step grid.
    #    radix=4, f=8 -> c_total=32; fold=4 -> (16,128) tiles, 2 grid steps.
    x2 = jax.random.normal(k2, (64, 32, 1, 1), dtype=jnp.float32)
    y2 = jax.block_until_ready(RSoftMax(4, 1)(x2))
    assert y2.shape == (64, 32), y2.shape
    assert jnp.allclose(y2, _reference(x2, 4, 1), atol=2e-3, rtol=2e-3)

    # 3) bf16 input (exercises bf16 VPU max + f32 exp/sum path).
    x3 = jax.random.normal(k3, (4, 64, 1, 1), dtype=jnp.bfloat16)  # card=2,radix=2,f=16
    y3 = jax.block_until_ready(RSoftMax(2, 2)(x3))
    assert y3.shape == (4, 64), y3.shape
    assert jnp.allclose(y3.astype(jnp.float32),
                        _reference(x3.astype(jnp.float32), 2, 2),
                        atol=2e-2, rtol=2e-2)

    # 4) radix == 1: sigmoid, original shape preserved.
    x4 = jax.random.normal(k4, (2, 8, 1, 1), dtype=jnp.float32)
    y4 = jax.block_until_ready(RSoftMax(1, 2)(x4))
    assert y4.shape == x4.shape, y4.shape
    assert jnp.allclose(y4, _reference(x4, 1, 2), atol=2e-3, rtol=2e-3)

    print("KERNEL_OK")
</pallas_src>

<mosaic_0001>
module attributes {stable_mosaic.version = 11 : i64} {
  func.func @_rsoftmax_kernel(%arg0: i32, %arg1: memref<1x32xf32, #tpu.memory_space<vmem>>, %arg2: memref<1x32xf32, #tpu.memory_space<vmem>>) attributes {dimension_semantics = [#tpu.dimension_semantics<parallel>], iteration_bounds = array<i64: 1>, scalar_prefetch = 0 : i64, scratch_operands = 0 : i64, tpu.core_type = #tpu.core_type<tc>, window_params = [{transform_indices = @transform_0, window_bounds = array<i64: 1, 32>}, {transform_indices = @transform_1, window_bounds = array<i64: 1, 32>}]} {
    %c0 = arith.constant 0 : index
    %c0_0 = arith.constant 0 : index
    %0 = vector.load %arg1[%c0, %c0_0] : memref<1x32xf32, #tpu.memory_space<vmem>>, vector<1x4xf32>
    %c0_1 = arith.constant 0 : index
    %c4 = arith.constant 4 : index
    %1 = vector.load %arg1[%c0_1, %c4] : memref<1x32xf32, #tpu.memory_space<vmem>>, vector<1x4xf32>
    %2 = arith.maximumf %0, %1 : vector<1x4xf32>
    %3 = arith.subf %0, %2 : vector<1x4xf32>
    %4 = math.exp %3 : vector<1x4xf32>
    %5 = arith.subf %1, %2 : vector<1x4xf32>
    %6 = math.exp %5 : vector<1x4xf32>
    %7 = arith.addf %4, %6 : vector<1x4xf32>
    %8 = tpu.reciprocal %7 {approx = true} : vector<1x4xf32> -> vector<1x4xf32>
    %9 = arith.mulf %4, %8 : vector<1x4xf32>
    %10 = arith.mulf %6, %8 : vector<1x4xf32>
    %c0_2 = arith.constant 0 : index
    %c8 = arith.constant 8 : index
    %11 = vector.load %arg1[%c0_2, %c8] : memref<1x32xf32, #tpu.memory_space<vmem>>, vector<1x4xf32>
    %c0_3 = arith.constant 0 : index
    %c12 = arith.constant 12 : index
    %12 = vector.load %arg1[%c0_3, %c12] : memref<1x32xf32, #tpu.memory_space<vmem>>, vector<1x4xf32>
    %13 = arith.maximumf %11, %12 : vector<1x4xf32>
    %14 = arith.subf %11, %13 : vector<1x4xf32>
    %15 = math.exp %14 : vector<1x4xf32>
    %16 = arith.subf %12, %13 : vector<1x4xf32>
    %17 = math.exp %16 : vector<1x4xf32>
    %18 = arith.addf %15, %17 : vector<1x4xf32>
    %19 = tpu.reciprocal %18 {approx = true} : vector<1x4xf32> -> vector<1x4xf32>
    %20 = arith.mulf %15, %19 : vector<1x4xf32>
    %21 = arith.mulf %17, %19 : vector<1x4xf32>
    %22 = tpu.concatenate %9, %20 in 1 : vector<1x4xf32>, vector<1x4xf32> -> vector<1x8xf32>
    %23 = tpu.concatenate %10, %21 in 1 : vector<1x4xf32>, vector<1x4xf32> -> vector<1x8xf32>
    %c0_4 = arith.constant 0 : index
    %c16 = arith.constant 16 : index
    %24 = vector.load %arg1[%c0_4, %c16] : memref<1x32xf32, #tpu.memory_space<vmem>>, vector<1x4xf32>
    %c0_5 = arith.constant 0 : index
    %c20 = arith.constant 20 : index
    %25 = vector.load %arg1[%c0_5, %c20] : memref<1x32xf32, #tpu.memory_space<vmem>>, vector<1x4xf32>
    %26 = arith.maximumf %24, %25 : vector<1x4xf32>
    %27 = arith.subf %24, %26 : vector<1x4xf32>
    %28 = math.exp %27 : vector<1x4xf32>
    %29 = arith.subf %25, %26 : vector<1x4xf32>
    %30 = math.exp %29 : vector<1x4xf32>
    %31 = arith.addf %28, %30 : vector<1x4xf32>
    %32 = tpu.reciprocal %31 {approx = true} : vector<1x4xf32> -> vector<1x4xf32>
    %33 = arith.mulf %28, %32 : vector<1x4xf32>
    %34 = arith.mulf %30, %32 : vector<1x4xf32>
    %c0_6 = arith.constant 0 : index
    %c24 = arith.constant 24 : index
    %35 = vector.load %arg1[%c0_6, %c24] : memref<1x32xf32, #tpu.memory_space<vmem>>, vector<1x4xf32>
    %c0_7 = arith.constant 0 : index
    %c28 = arith.constant 28 : index
    %36 = vector.load %arg1[%c0_7, %c28] : memref<1x32xf32, #tpu.memory_space<vmem>>, vector<1x4xf32>
    %37 = arith.maximumf %35, %36 : vector<1x4xf32>
    %38 = arith.subf %35, %37 : vector<1x4xf32>
    %39 = math.exp %38 : vector<1x4xf32>
    %40 = arith.subf %36, %37 : vector<1x4xf32>
    %41 = math.exp %40 : vector<1x4xf32>
    %42 = arith.addf %39, %41 : vector<1x4xf32>
    %43 = tpu.reciprocal %42 {approx = true} : vector<1x4xf32> -> vector<1x4xf32>
    %44 = arith.mulf %39, %43 : vector<1x4xf32>
    %45 = arith.mulf %41, %43 : vector<1x4xf32>
    %46 = tpu.concatenate %33, %44 in 1 : vector<1x4xf32>, vector<1x4xf32> -> vector<1x8xf32>
    %47 = tpu.concatenate %34, %45 in 1 : vector<1x4xf32>, vector<1x4xf32> -> vector<1x8xf32>
    %48 = tpu.concatenate %22, %23, %46, %47 in 1 : vector<1x8xf32>, vector<1x8xf32>, vector<1x8xf32>, vector<1x8xf32> -> vector<1x32xf32>
    %c0_8 = arith.constant 0 : index
    %c0_9 = arith.constant 0 : index
    %49 = vector.load %arg2[%c0_8, %c0_9] : memref<1x32xf32, #tpu.memory_space<vmem>>, vector<1x32xf32>
    tpu.vector_store %arg2[%c0_8, %c0_9], %48 {strides = array<i32>} : memref<1x32xf32, #tpu.memory_space<vmem>>, vector<1x32xf32>,
    return
  }
  func.func @transform_0(%arg0: i32) -> (i32, i32) {
    %c0_i32 = arith.constant 0 : i32
    %c0_i32_0 = arith.constant 0 : i32
    return %arg0, %c0_i32 : i32, i32
  }
  func.func @transform_1(%arg0: i32) -> (i32, i32) {
    %c0_i32 = arith.constant 0 : i32
    %c0_i32_0 = arith.constant 0 : i32
    return %arg0, %c0_i32 : i32, i32
  }
}

</mosaic_0001>

<bundles_post_ra>
// kernel: tpu_custom_call.1
= control target key start
LH: loop header
LB: loop body
LE: loop exit
PB: predicated region body
PF: predicated region fallthrough
CT: control target
= control target key end

     0   :  { %6 = vsyncpa [#allocation3], 0  ;;  %s238_s0 = inlined_call_operand.hbm [shape: f32[1,32], index: 0, kind: input, shape index: {}]   ;;  %s239_s1 = inlined_call_operand.hbm [shape: f32[1,32], index: 1, kind: output, shape index: {}]  }
   0x1   :  { %7 = vsyncpa [#allocation4], 0  ;;  %s185_s6 = smov [#allocation2]   ;;  %s137_s10 = scalar_lea.hbm %s238_s0, 16 }
   0x2   :  { %s14_s7 = sshll.u32 %s185_s6, 4  ;;  %p138_p0 = scmp.ne.s32.totalorder %s238_s0, %s137_s10  ;;  %s15_s7 = int_to_ptr.vmem [resolvable:$true] %s14_s7 }
   0x3   :  { %p141_p1 = scmp.lt.u32.totalorder %s137_s10, %s238_s0 }
   0x5   :  { %p143_p2 = pnand %p141_p1, %p138_p0 }
   0x7   :  { %146 = shalt.err (!%p143_p2)
}
   0x8   :  { %s147_s15 = scalar_lea.vmem %s15_s7, 16  ;;  %s151_s16 = scalar_lea.vmem %s15_s7, 32 }
   0x9   :  { %p148_p3 = scmp.ne.s32.totalorder %s15_s7, %s147_s15  ;;  %p152_p4 = scmp.lt.s32.totalorder %s15_s7, %s15_s7 }
   0xa   :  { %p153_p5 = scmp.lt.s32.totalorder %s151_s16, %s147_s15 }
   0xc   :  { %p154_p6 = por %p153_p5, %p152_p4 }
   0xe   :  { %p155_p7 = pnand %p154_p6, %p148_p3 }
  0x10   :  { %158 = shalt.err (!%p155_p7)
}
  0x11   :  { %17 = dma.hbm_to_vmem [thread:$0]  %s238_s0, 16, %s15_s7, [#allocation3]  }
  0x12   :  { %181 = dma.done.wait [#allocation3], 16  }
  0x13   :  { %182 = vsyncadd [#allocation3], 4294967280  ;;  %v21_v0 = vld [vmem:[#allocation2] sm:$0x1]  ;;  %s186_s19 = smov 124   ;;  %s187_s20 = smov 4   ;;  %v50_v12 = vlaneseq }
  0x14   :  { %23 = vrot.lane.b32.xlu0 %v21_v0, %s186_s19  ;;  %s188_s0 = smov 108   ;;  %s189_s21 = smov 112   ;;  %vm57_vm0 = vcmask 31744   ;;  %vm97_vm1 = vcmask 64512   ;;  %vm99_vm2 = vcmask 130048   ;;  %vm101_vm3 = vcmask 195584  }
  0x15   :  { %v51_v13 = vshrl.u32 %v50_v12, 7  ;;  %s190_s22 = smov 120   ;;  %s191_s23 = smov 104   ;;  %vm103_vm4 = vcmask 253952  }
  0x16   :  { %s192_s24 = smov 16   ;;  %s193_s25 = smov 8  }
  0x17   :  { %v52_v14 = vsub.s32 0, %v51_v13  ;;  %s194_s26 = smov 24   ;;  %s195_s27 = smov [#allocation5]  }
  0x18   :  { %s111_s28 = sshll.u32 %s195_s27, 4  ;;  %s112_s28 = int_to_ptr.vmem [resolvable:$true] %s111_s28 }
  0x19   :  { %s159_s29 = scalar_lea.vmem %s112_s28, 16  ;;  %s163_s30 = scalar_lea.vmem %s112_s28, 32 }
  0x1a   :  { %p160_p8 = scmp.ne.s32.totalorder %s112_s28, %s159_s29  ;;  %p164_p9 = scmp.lt.s32.totalorder %s112_s28, %s112_s28 }
  0x1b   :  { %p165_p10 = scmp.lt.s32.totalorder %s163_s30, %s159_s29 }
  0x1d   :  { %p166_p11 = por %p165_p10, %p164_p9 }
  0x1f   :  { %p167_p12 = pnand %p166_p11, %p160_p8 }
  0x86   :  { %v24_v1 = vpop.permute.xlu0 %23 }
  0x87   :  { %v26_v2 = vmax.f32 %v21_v0, %v24_v1 }
  0x89   :  { %31 = vrot.lane.b32.xlu0 %v26_v2, %s187_s20  ;;  %v27_v7 = vsub.f32 %v21_v0, %v26_v2 }
  0x8b   :  { %v28_v8 = vmul.f32 1.442695, %v27_v7 }
  0xfb   :  { %v32_v3 = vpop.permute.xlu0 %31 }
  0xfc   :  { %v34_v4 = vsub.f32 %v21_v0, %v32_v3 }
  0xfe   :  { %v35_v5 = vmul.f32 1.442695, %v34_v4 }
 0x100   :  { %131 = vpow2.f32 %v35_v5 }
 0x101   :  { %133 = vpow2.f32 %v28_v8 }
 0x10a   :  { %v132_v6 = vpop.eup %131 }
 0x10b   :  { %38 = vrot.lane.b32.xlu1 %v132_v6, %s186_s19  ;;  %v134_v9 = vpop.eup %133 }
 0x17d   :  { %v39_v10 = vpop.permute.xlu1 %38 }
 0x17e   :  { %v41_v11 = vadd.f32 %v134_v9, %v39_v10 }
 0x180   :  { %135 = vrcp.f32 %v41_v11 }
 0x18a   :  { %v136_v15 = vpop.eup %135 }
 0x18b   :  { %45 = vrot.lane.b32.xlu1 %v136_v15, %s187_s20  ;;  %v43_v16 = vmul.f32 %v136_v15, %v134_v9 }
 0x18d   :  { %v53_v17 = vrot.slane %v43_v16, %v52_v14 }
 0x18f   :  { %74 = vrot.lane.b32.xlu1 %v53_v17, %s188_s0  ;;  %71 = vrot.lane.b32.xlu0 %v53_v17, %s189_s21 }
 0x1fd   :  { %v46_v18 = vpop.permute.xlu1 %45 }
 0x1fe   :  { %v48_v19 = vmul.f32 %v132_v6, %v46_v18 }
 0x200   :  { %v63_v20 = vrot.slane %v48_v19, %v52_v14 }
 0x201   :  { %v75_v21 = vpop.permute.xlu1 %74  ;;  %v72_v22 = vpop.permute.xlu0 %71 }
 0x202   :  { %67 = vrot.lane.b32.xlu1 %v63_v20, %s190_s22  ;;  %64 = vrot.lane.b32.xlu0 %v63_v20, %s186_s19  ;;  %v77_v23 = vsel %vm57_vm0, %v72_v22, %v75_v21 }
 0x206   :  { %81 = vrot.lane.b32.xlu1 %v63_v20, %s191_s23  ;;  %78 = vrot.lane.b32.xlu0 %v63_v20, %s188_s0 }
 0x20a   :  { %54 = vrot.lane.b32.xlu0 %v53_v17, %s186_s19 }
 0x20e   :  { %90 = vrot.lane.b32.xlu0 %v77_v23, %s192_s24 }
 0x274   :  { %v68_v24 = vpop.permute.xlu1 %67  ;;  %v65_v25 = vpop.permute.xlu0 %64 }
 0x275   :  { %v70_v26 = vsel %vm57_vm0, %v65_v25, %v68_v24 }
 0x276   :  { %86 = vrot.lane.b32.xlu1 %v70_v26, %s193_s25 }
 0x278   :  { %v82_v27 = vpop.permute.xlu1 %81  ;;  %v79_v28 = vpop.permute.xlu0 %78 }
 0x279   :  { %v84_v29 = vsel %vm57_vm0, %v79_v28, %v82_v27 }
 0x27a   :  { %94 = vrot.lane.b32.xlu1 %v84_v29, %s194_s26 }
 0x27c   :  { %v55_v30 = vpop.permute.xlu0 %54 }
 0x27d   :  { %v58_v31 = vsel %vm57_vm0, %v43_v16, %v55_v30 }
 0x280   :  { %v91_v34 = vpop.permute.xlu0 %90 }
 0x2e8   :  { %v87_v32 = vpop.permute.xlu1 %86 }
 0x2e9   :  { %v98_v33 = vsel %vm97_vm1, %v58_v31, %v87_v32 }
 0x2ea   :  { %v100_v36 = vsel %vm99_vm2, %v98_v33, %v91_v34 }
 0x2ec   :  { %v95_v35 = vpop.permute.xlu1 %94 }
 0x2ed   :  { %v102_v37 = vsel %vm101_vm3, %v100_v36, %v95_v35 }
 0x2ee   :  { %104 = vst.msk [vmem:[#allocation5] sm:$0x1] %vm103_vm4, %v102_v37 }
 0x2ef   :  { %170 = shalt.err (!%p167_p12)
}
 0x2f0   :  { %s171_s4 = scalar_lea.hbm %s239_s1, 16 }
 0x2f1   :  { %p172_p13 = scmp.ne.s32.totalorder %s239_s1, %s171_s4  ;;  %p175_p0 = scmp.lt.u32.totalorder %s171_s4, %s239_s1 }
 0x2f3   :  { %p177_p1 = pnand %p175_p0, %p172_p13 }
 0x2f5   :  { %180 = shalt.err (!%p177_p1)
}
 0x2f6   :  { %114 = dma.vmem_to_hbm [thread:$0]  %s112_s28, 16, %s239_s1, [#allocation4]  }
 0x2f7   :  { %183 = dma.done.wait [#allocation4], 16  }
 0x2f8   :  { %184 = vsyncadd [#allocation4], 4294967280 }
 0x2f9   :  { %118 = vsyncpa [#allocation3], 1 }
 0x2fa   :  { %119 = vsyncpa [#allocation4], 1 }

</bundles_post_ra>
